<compile_context>
chip_gen: v7x
topology: tpu7x:2x2x1
jax: 0.10.0
libtpu: 0.0.40
codegen_flags: <defaults>
</compile_context>

<pallas_src>
import functools

import jax
import jax.numpy as jnp
from jax.experimental import pallas as pl
from jax.experimental.pallas import tpu as pltpu

LANE = 128  # TPU lane width: block last dims should be multiples of this.


def _round_up(x, m):
    return (x + m - 1) // m * m


def _row_align(dtype):
    # Sublane packing: f32 -> 8 rows/vreg, bf16 -> 16, int8/fp8 -> 32.
    return max(8, 32 // jnp.dtype(dtype).itemsize)


def _nbytes(a):
    return a.size * a.dtype.itemsize


@functools.lru_cache(maxsize=None)
def _vmem_capacity_bytes():
    # Generation-aware VMEM capacity (128 MiB on v5e/v6e, 64 MiB per TC on v7x).
    try:
        cap = getattr(pltpu.get_tpu_info(), "vmem_capacity_bytes", None)
        if cap:
            return int(cap)
    except Exception:
        pass
    return 64 << 20  # conservative fallback: v7x per-TensorCore VMEM


def _default_max_tm():
    # v5e/v6e (128 MiB VMEM): bigger row tiles amortize the ~0.35us per-grid-step
    # overhead on the memory-bound linear path; v7x (64 MiB) stays at 512.
    return 1024 if _vmem_capacity_bytes() >= (96 << 20) else 512


def _pick_tm(m, dtype, max_tm):
    align = _row_align(dtype)
    return max(align, min(max_tm, _round_up(m, align)))


def _vmem_limit_bytes(working_set_bytes):
    # Ask for the working set plus headroom, capped at ~0.8x physical VMEM so
    # the compiler keeps room for internal scratch/spill on every generation.
    budget = int(_vmem_capacity_bytes() * 0.8)
    return int(min(max(working_set_bytes + (8 << 20), 32 << 20), budget))


@functools.lru_cache(maxsize=None)
def _single_buffer_supported():
    """Probe whether pipeline_mode=pl.Buffered(1) compiles, runs and is correct."""
    try:
        def copy_kernel(x_ref, o_ref):
            o_ref[...] = x_ref[...]

        x = jnp.arange(8 * 128, dtype=jnp.float32).reshape(8, 128)
        out = pl.pallas_call(
            copy_kernel,
            out_shape=jax.ShapeDtypeStruct((16, 128), jnp.float32),
            grid=(2,),
            in_specs=[pl.BlockSpec((8, 128), lambda i: (0, 0),
                                   pipeline_mode=pl.Buffered(1))],
            out_specs=pl.BlockSpec((8, 128), lambda i: (i, 0)),
        )(x)
        out = jax.block_until_ready(out)
        return bool(jnp.allclose(out, jnp.concatenate([x, x], axis=0)))
    except Exception:
        return False


def _const_spec(shape, index_map):
    # Constant-index weight/bias blocks: single-buffer them so the pipeline does
    # not double their VMEM footprint (fetched once, never change).
    if _single_buffer_supported():
        return pl.BlockSpec(shape, index_map, pipeline_mode=pl.Buffered(1))
    return pl.BlockSpec(shape, index_map)


# ------------------------- Pallas kernels (hot path) -------------------------

def _mlp_project_kernel(x_ref, w1_ref, b1_ref, w2_ref, b2_ref, o_ref, h_ref):
    # nn.Sequential(Linear(cond_dim, out), SiLU(), Linear(out, out)), column-tiled.
    @pl.when(pl.program_id(1) == 0)
    def _():
        # Hidden activations for this row tile: computed once per row tile and
        # reused for every output-column tile j.  Kept f32 for accuracy.
        h = jnp.dot(x_ref[...], w1_ref[...],
                    preferred_element_type=jnp.float32) + b1_ref[...]
        h_ref[...] = h * jax.nn.sigmoid(h)     # SiLU (EUP slot, ~free next to MXU)

    # Cast the hidden to the weight dtype so bf16 weights hit the bf16 MXU path
    # (no-op for f32 weights); accumulation stays f32 via preferred_element_type.
    y = jnp.dot(h_ref[...].astype(w2_ref.dtype), w2_ref[...],
                preferred_element_type=jnp.float32) + b2_ref[...]
    o_ref[...] = y.astype(o_ref.dtype)


def _linear_project_kernel(x_ref, w_ref, b_ref, o_ref):
    y = jnp.dot(x_ref[...], w_ref[...],
                preferred_element_type=jnp.float32) + b_ref[...]
    o_ref[...] = y.astype(o_ref.dtype)


# ------------------------------ wrappers --------------------------------------

def _mlp_project(x2d, w1, b1, w2, b2, *, max_tn=512):
    M, K = x2d.shape                    # K already padded to a multiple of 128
    N = w1.shape[1]                     # lane-dense padded output / hidden width
    in_bytes = x2d.dtype.itemsize
    p_bytes = w1.dtype.itemsize
    align = _row_align(x2d.dtype)

    tm = _pick_tm(M, x2d.dtype, _default_max_tm())
    # Keep the f32 hidden scratch bounded (~8 MiB) so it never dominates VMEM.
    scratch_rows = max(align, ((8 << 20) // (N * 4)) // align * align)
    tm = min(tm, scratch_rows)
    tn = min(N, max_tn)

    grid = (pl.cdiv(M, tm), pl.cdiv(N, tn))
    # TODO(synk): when grid[0] == 1 on a 2-TensorCore part (v7x) the second TC
    # idles; recomputing the hidden per column tile would let j be "parallel"
    # at the cost of redundant first-layer matmuls.
    # TODO(synk): fp8 storage for w2 on v7x (bf16 activations, f32 accum) would
    # halve its footprint again for very large output_dim.

    const_bufs = 1 if _single_buffer_supported() else 2
    working_set = (
        2 * tm * K * in_bytes                  # x tile (double-buffered)
        + 2 * tm * tn * in_bytes               # output tile (double-buffered)
        + tm * N * 4                           # f32 hidden scratch
        + tm * N * 4                           # f32 first-dot result (transient)
        + tm * N * p_bytes                     # cast copy of hidden feeding MXU
        + tm * tn * 4                          # f32 second-dot result (transient)
        + const_bufs * (_nbytes(w1) + _nbytes(b1))
        + 2 * (N * tn + tn) * p_bytes          # w2/b2 column blocks (double-buffered)
    )
    cost = pl.CostEstimate(
        flops=2 * M * K * N + 2 * M * N * N,
        transcendentals=M * N,
        bytes_accessed=int(_nbytes(x2d) + _nbytes(w1) + _nbytes(b1)
                           + grid[0] * (_nbytes(w2) + _nbytes(b2))
                           + M * N * in_bytes),
    )
    return pl.pallas_call(
        _mlp_project_kernel,
        out_shape=jax.ShapeDtypeStruct((M, N), x2d.dtype),
        grid=grid,
        in_specs=[
            pl.BlockSpec((tm, K), lambda i, j: (i, 0)),
            _const_spec((K, N), lambda i, j: (0, 0)),
            _const_spec((1, N), lambda i, j: (0, 0)),
            pl.BlockSpec((N, tn), lambda i, j: (0, j)),
            pl.BlockSpec((1, tn), lambda i, j: (0, j)),
        ],
        out_specs=pl.BlockSpec((tm, tn), lambda i, j: (i, j)),
        scratch_shapes=[pltpu.VMEM((tm, N), jnp.float32)],
        compiler_params=pltpu.CompilerParams(
            dimension_semantics=("parallel", "arbitrary"),
            vmem_limit_bytes=_vmem_limit_bytes(working_set)),
        cost_estimate=cost,
    )(x2d, w1, b1, w2, b2)


def _linear_project(x2d, w, b):
    M, K = x2d.shape
    N = w.shape[1]
    in_bytes = x2d.dtype.itemsize
    tm = _pick_tm(M, x2d.dtype, _default_max_tm())

    const_bufs = 1 if _single_buffer_supported() else 2
    working_set = (
        2 * tm * K * in_bytes
        + 2 * tm * N * in_bytes
        + tm * N * 4                           # f32 dot result before cast
        + const_bufs * (_nbytes(w) + _nbytes(b))
    )
    cost = pl.CostEstimate(
        flops=2 * M * K * N,
        transcendentals=0,
        bytes_accessed=int(_nbytes(x2d) + _nbytes(w) + _nbytes(b)
                           + M * N * in_bytes),
    )
    return pl.pallas_call(
        _linear_project_kernel,
        out_shape=jax.ShapeDtypeStruct((M, N), x2d.dtype),
        grid=(pl.cdiv(M, tm),),
        in_specs=[
            pl.BlockSpec((tm, K), lambda i: (i, 0)),
            _const_spec((K, N), lambda i: (0, 0)),
            _const_spec((1, N), lambda i: (0, 0)),
        ],
        out_specs=pl.BlockSpec((tm, N), lambda i: (i, 0)),
        compiler_params=pltpu.CompilerParams(
            dimension_semantics=("parallel",),
            vmem_limit_bytes=_vmem_limit_bytes(working_set)),
        cost_estimate=cost,
    )(x2d, w, b)


# ------------------------------ Conditioner ----------------------------------

class Conditioner:
    """JAX/Pallas port of the PyTorch Conditioner module.

    The projection (Linear / MLP) is the compute hot path and runs inside a
    Pallas kernel; parameter setup and reshapes are plain JAX glue.
    """

    def __init__(self, output_dim, name, cond_dim=None, projection="none",
                 uncond_type="none", *, key=None, dtype=jnp.float32,
                 param_dtype=None):
        self.name = name
        self.output_dim = output_dim
        self.cond_dim = cond_dim = cond_dim or output_dim
        self.projection = projection
        self.dtype = dtype
        # On v6e/v7x use param_dtype=jnp.bfloat16 for MXU peak and halved weight
        # traffic; kernel accumulation stays f32 either way.  The f32 default
        # keeps the numerics identical to the PyTorch reference.
        self.param_dtype = param_dtype if param_dtype is not None else dtype
        # Lane-dense padded widths -> unmasked, full-depth MXU work in-kernel.
        self.n_pad = _round_up(output_dim, LANE)
        self.k_pad = _round_up(cond_dim, LANE)

        key = key if key is not None else jax.random.PRNGKey(0)
        k1, k2, k3, k4 = jax.random.split(key, 4)

        def _linear_init(kw, kb, fan_in, fan_out, fan_in_pad, fan_out_pad):
            # torch.nn.Linear default init: U(-1/sqrt(fan_in), 1/sqrt(fan_in)),
            # stored transposed (in, out) and zero-padded on both axes (the pad
            # rows/cols are exact zeros end-to-end).
            bound = 1.0 / (fan_in ** 0.5)
            w = jax.random.uniform(kw, (fan_in, fan_out), jnp.float32, -bound, bound)
            b = jax.random.uniform(kb, (1, fan_out), jnp.float32, -bound, bound)
            w = jnp.pad(w, ((0, fan_in_pad - fan_in), (0, fan_out_pad - fan_out)))
            b = jnp.pad(b, ((0, 0), (0, fan_out_pad - fan_out)))
            return w.astype(self.param_dtype), b.astype(self.param_dtype)

        self.params = {}
        if projection == "linear":
            self.params["w"], self.params["b"] = _linear_init(
                k1, k2, cond_dim, output_dim, self.k_pad, self.n_pad)
        elif projection == "mlp":
            self.params["w1"], self.params["b1"] = _linear_init(
                k1, k2, cond_dim, output_dim, self.k_pad, self.n_pad)
            # Second layer: hidden (fan_in) axis padded to n_pad; the zero rows
            # line up with the zero hidden columns from the padded first layer.
            self.params["w2"], self.params["b2"] = _linear_init(
                k3, k4, output_dim, output_dim, self.n_pad, self.n_pad)
        # projection == "none" -> identity

        self.uncond_vector = None
        if uncond_type == "learned":
            self.uncond_vector = jnp.zeros((output_dim,), dtype)

    def apply_cond(self, *inputs):
        # TODO(synk): abstract (raise NotImplementedError) in the PyTorch base
        # class; the demo passes the single condition tensor through unchanged
        # so the projection path can be exercised.
        assert len(inputs) == 1
        return inputs[0]

    def project(self, cond):
        if self.projection == "none":
            return cond
        lead_shape = cond.shape[:-1]
        x2d = cond.reshape(-1, cond.shape[-1])
        if x2d.shape[-1] != self.k_pad:
            # Lane-dense contraction dim: zero x columns meet zero weight rows.
            x2d = jnp.pad(x2d, ((0, 0), (0, self.k_pad - x2d.shape[-1])))
        if self.projection == "linear":
            y = _linear_project(x2d, self.params["w"], self.params["b"])
        else:  # mlp
            y = _mlp_project(x2d, self.params["w1"], self.params["b1"],
                             self.params["w2"], self.params["b2"])
        if self.n_pad != self.output_dim:
            # Crop the lane-dense zero pad (pick output_dim as a multiple of
            # 128 in production to make this a no-op).
            y = y[:, : self.output_dim]
        return y.reshape(*lead_shape, self.output_dim)

    def __call__(self, inputs):
        if inputs is None:
            assert self.uncond_vector is not None
            return self.uncond_vector.reshape(1, 1, -1)
        cond = self.apply_cond(*inputs)
        return self.project(cond)


# --------------------------------- driver ------------------------------------

if __name__ == "__main__":
    key = jax.random.PRNGKey(0)
    k_param, k_param2, k_data = jax.random.split(key, 3)

    B, S, cond_dim, output_dim = 2, 8, 32, 32
    cond = jax.random.normal(k_data, (B, S, cond_dim), jnp.float32)
    x2 = cond.reshape(-1, cond_dim)
    D, K = output_dim, cond_dim

    # ---- MLP projection (f32), checked against a pure-JAX reference ---------
    mlp = Conditioner(output_dim=output_dim, name="mlp_demo", cond_dim=cond_dim,
                      projection="mlp", uncond_type="learned", key=k_param)
    out = jax.block_until_ready(mlp((cond,)))
    assert out.shape == (B, S, output_dim)

    p = mlp.params
    h_ref = x2 @ p["w1"][:K, :D] + p["b1"][0, :D]
    h_ref = h_ref * jax.nn.sigmoid(h_ref)
    ref = (h_ref @ p["w2"][:D, :D] + p["b2"][0, :D]).reshape(B, S, D)
    assert jnp.allclose(out, ref, atol=1e-4, rtol=1e-4)

    # ---- Linear projection (f32) ---------------------------------------------
    lin = Conditioner(output_dim=output_dim, name="lin_demo", cond_dim=cond_dim,
                      projection="linear", uncond_type="none", key=k_param2)
    out_lin = jax.block_until_ready(lin((cond,)))
    ref_lin = (x2 @ lin.params["w"][:K, :D]
               + lin.params["b"][0, :D]).reshape(B, S, D)
    assert jnp.allclose(out_lin, ref_lin, atol=1e-4, rtol=1e-4)

    # ---- bf16 weights/activations (v6e/v7x fast path), loose check -----------
    mlp_bf16 = Conditioner(output_dim=output_dim, name="mlp_bf16",
                           cond_dim=cond_dim, projection="mlp",
                           uncond_type="learned", key=k_param,
                           dtype=jnp.bfloat16, param_dtype=jnp.bfloat16)
    out_bf16 = jax.block_until_ready(mlp_bf16((cond.astype(jnp.bfloat16),)))
    assert out_bf16.shape == (B, S, output_dim)
    assert jnp.allclose(out_bf16.astype(jnp.float32), ref, atol=1e-1, rtol=1e-1)

    # ---- unconditional path (learned uncond vector, view(1,1,-1)) ------------
    uncond = jax.block_until_ready(mlp(None))
    assert uncond.shape == (1, 1, output_dim)

    print("KERNEL_OK")
</pallas_src>

<mosaic_0001>
module attributes {stable_mosaic.version = 11 : i64} {
  func.func @copy_kernel(%arg0: i32, %arg1: memref<8x128xf32, #tpu.memory_space<vmem>>, %arg2: memref<8x128xf32, #tpu.memory_space<vmem>>) attributes {dimension_semantics = [#tpu.dimension_semantics<arbitrary>], iteration_bounds = array<i64: 2>, scalar_prefetch = 0 : i64, scratch_operands = 0 : i64, tpu.core_type = #tpu.core_type<tc>, window_params = [{pipeline_mode = #tpu.pipeline_mode<synchronous>, transform_indices = @transform_0, window_bounds = array<i64: 8, 128>}, {transform_indices = @transform_1, window_bounds = array<i64: 8, 128>}]} {
    %c0 = arith.constant 0 : index
    %c0_0 = arith.constant 0 : index
    %0 = vector.load %arg1[%c0, %c0_0] : memref<8x128xf32, #tpu.memory_space<vmem>>, vector<8x128xf32>
    %c0_1 = arith.constant 0 : index
    %c0_2 = arith.constant 0 : index
    %1 = vector.load %arg2[%c0_1, %c0_2] : memref<8x128xf32, #tpu.memory_space<vmem>>, vector<8x128xf32>
    tpu.vector_store %arg2[%c0_1, %c0_2], %0 {strides = array<i32>} : memref<8x128xf32, #tpu.memory_space<vmem>>, vector<8x128xf32>,
    return
  }
  func.func @transform_0(%arg0: i32) -> (i32, i32) {
    %c0_i32 = arith.constant 0 : i32
    %c0_i32_0 = arith.constant 0 : i32
    %c0_i32_1 = arith.constant 0 : i32
    return %c0_i32, %c0_i32_0 : i32, i32
  }
  func.func @transform_1(%arg0: i32) -> (i32, i32) {
    %c0_i32 = arith.constant 0 : i32
    %c0_i32_0 = arith.constant 0 : i32
    return %arg0, %c0_i32 : i32, i32
  }
}

module attributes {stable_mosaic.version = 11 : i64} {
  func.func @_mlp_project_kernel(%arg0: i32, %arg1: i32, %arg2: memref<16x128xf32, #tpu.memory_space<vmem>>, %arg3: memref<128x128xf32, #tpu.memory_space<vmem>>, %arg4: memref<1x128xf32, #tpu.memory_space<vmem>>, %arg5: memref<128x128xf32, #tpu.memory_space<vmem>>, %arg6: memref<1x128xf32, #tpu.memory_space<vmem>>, %arg7: memref<16x128xf32, #tpu.memory_space<vmem>>, %arg8: memref<16x128xf32, #tpu.memory_space<vmem>>) attributes {dimension_semantics = [#tpu.dimension_semantics<parallel>, #tpu.dimension_semantics<arbitrary>], iteration_bounds = array<i64: 1, 1>, scalar_prefetch = 0 : i64, scratch_operands = 1 : i64, tpu.core_type = #tpu.core_type<tc>, window_params = [{transform_indices = @transform_0, window_bounds = array<i64: 16, 128>}, {pipeline_mode = #tpu.pipeline_mode<synchronous>, transform_indices = @transform_1, window_bounds = array<i64: 128, 128>}, {pipeline_mode = #tpu.pipeline_mode<synchronous>, transform_indices = @transform_2, window_bounds = array<i64: 1, 128>}, {transform_indices = @transform_3, window_bounds = array<i64: 128, 128>}, {transform_indices = @transform_4, window_bounds = array<i64: 1, 128>}, {transform_indices = @transform_5, window_bounds = array<i64: 16, 128>}]} {
    %c0_i32 = arith.constant 0 : i32
    %0 = arith.cmpi eq, %arg1, %c0_i32 : i32
    %1 = arith.extui %0 : i1 to i32
    %c0_i32_0 = arith.constant 0 : i32
    %2 = arith.cmpi ne, %1, %c0_i32_0 : i32
    scf.if %2 {
      %c0_8 = arith.constant 0 : index
      %c0_9 = arith.constant 0 : index
      %10 = vector.load %arg2[%c0_8, %c0_9] : memref<16x128xf32, #tpu.memory_space<vmem>>, vector<16x128xf32>
      %c0_10 = arith.constant 0 : index
      %c0_11 = arith.constant 0 : index
      %11 = vector.load %arg3[%c0_10, %c0_11] : memref<128x128xf32, #tpu.memory_space<vmem>>, vector<128x128xf32>
      %cst_12 = arith.constant dense<0.000000e+00> : vector<16x128xf32>
      %12 = tpu.matmul %10, %11, %cst_12 {dimension_numbers = #tpu.dot_dimension_numbers<[1], [0], [0], [1], [0, 0, 1, 1], [], []>} : vector<16x128xf32>, vector<128x128xf32>, vector<16x128xf32> -> vector<16x128xf32>
      %c0_13 = arith.constant 0 : index
      %c0_14 = arith.constant 0 : index
      %13 = vector.load %arg4[%c0_13, %c0_14] : memref<1x128xf32, #tpu.memory_space<vmem>>, vector<1x128xf32>
      %14 = vector.broadcast %13 : vector<1x128xf32> to vector<16x128xf32>
      %15 = arith.addf %12, %14 : vector<16x128xf32>
      %16 = arith.negf %15 : vector<16x128xf32>
      %17 = math.exp %16 : vector<16x128xf32>
      %cst_15 = arith.constant 1.000000e+00 : f32
      %18 = vector.broadcast %cst_15 : f32 to vector<16x128xf32>
      %19 = arith.addf %18, %17 : vector<16x128xf32>
      %20 = arith.divf %18, %19 : vector<16x128xf32>
      %21 = arith.mulf %15, %20 : vector<16x128xf32>
      %c0_16 = arith.constant 0 : index
      %c0_17 = arith.constant 0 : index
      %22 = vector.load %arg8[%c0_16, %c0_17] : memref<16x128xf32, #tpu.memory_space<vmem>>, vector<16x128xf32>
      tpu.vector_store %arg8[%c0_16, %c0_17], %21 {strides = array<i32>} : memref<16x128xf32, #tpu.memory_space<vmem>>, vector<16x128xf32>,
    } else {
    }
    %c0 = arith.constant 0 : index
    %c0_1 = arith.constant 0 : index
    %3 = vector.load %arg8[%c0, %c0_1] : memref<16x128xf32, #tpu.memory_space<vmem>>, vector<16x128xf32>
    %c0_2 = arith.constant 0 : index
    %c0_3 = arith.constant 0 : index
    %4 = vector.load %arg5[%c0_2, %c0_3] : memref<128x128xf32, #tpu.memory_space<vmem>>, vector<128x128xf32>
    %cst = arith.constant dense<0.000000e+00> : vector<16x128xf32>
    %5 = tpu.matmul %3, %4, %cst {dimension_numbers = #tpu.dot_dimension_numbers<[1], [0], [0], [1], [0, 0, 1, 1], [], []>} : vector<16x128xf32>, vector<128x128xf32>, vector<16x128xf32> -> vector<16x128xf32>
    %c0_4 = arith.constant 0 : index
    %c0_5 = arith.constant 0 : index
    %6 = vector.load %arg6[%c0_4, %c0_5] : memref<1x128xf32, #tpu.memory_space<vmem>>, vector<1x128xf32>
    %7 = vector.broadcast %6 : vector<1x128xf32> to vector<16x128xf32>
    %8 = arith.addf %5, %7 : vector<16x128xf32>
    %c0_6 = arith.constant 0 : index
    %c0_7 = arith.constant 0 : index
    %9 = vector.load %arg7[%c0_6, %c0_7] : memref<16x128xf32, #tpu.memory_space<vmem>>, vector<16x128xf32>
    tpu.vector_store %arg7[%c0_6, %c0_7], %8 {strides = array<i32>} : memref<16x128xf32, #tpu.memory_space<vmem>>, vector<16x128xf32>,
    return
  }
  func.func @transform_0(%arg0: i32, %arg1: i32) -> (i32, i32) {
    %c0_i32 = arith.constant 0 : i32
    %c0_i32_0 = arith.constant 0 : i32
    return %arg0, %c0_i32 : i32, i32
  }
  func.func @transform_1(%arg0: i32, %arg1: i32) -> (i32, i32) {
    %c0_i32 = arith.constant 0 : i32
    %c0_i32_0 = arith.constant 0 : i32
    %c0_i32_1 = arith.constant 0 : i32
    return %c0_i32, %c0_i32_0 : i32, i32
  }
  func.func @transform_2(%arg0: i32, %arg1: i32) -> (i32, i32) {
    %c0_i32 = arith.constant 0 : i32
    %c0_i32_0 = arith.constant 0 : i32
    %c0_i32_1 = arith.constant 0 : i32
    return %c0_i32, %c0_i32_0 : i32, i32
  }
  func.func @transform_3(%arg0: i32, %arg1: i32) -> (i32, i32) {
    %c0_i32 = arith.constant 0 : i32
    %c0_i32_0 = arith.constant 0 : i32
    return %c0_i32, %arg1 : i32, i32
  }
  func.func @transform_4(%arg0: i32, %arg1: i32) -> (i32, i32) {
    %c0_i32 = arith.constant 0 : i32
    %c0_i32_0 = arith.constant 0 : i32
    return %c0_i32, %arg1 : i32, i32
  }
  func.func @transform_5(%arg0: i32, %arg1: i32) -> (i32, i32) {
    %c0_i32 = arith.constant 0 : i32
    return %arg0, %arg1 : i32, i32
  }
}

</mosaic_0001>

<bundles_post_ra>
// kernel: tpu_custom_call.1
= control target key start
LH: loop header
LB: loop body
LE: loop exit
PB: predicated region body
PF: predicated region fallthrough
CT: control target
= control target key end

     0   :  { %6 = vsyncpa [#allocation3], 0  ;;  %s481_s0 = inlined_call_operand.hbm [shape: f32[8,128], index: 0, kind: input, shape index: {}]   ;;  %s482_s1 = inlined_call_operand.hbm [shape: f32[16,128], index: 1, kind: output, shape index: {}]  }
   0x1   :  { %7 = vsyncpa [#allocation4], 0 }
   0x2   :  { %9 = vsyncpa [#allocation4 + $0x1], 0  ;;  %s351_s6 = smov 0   ;;  %s353_s7 = smov 0  }
   0x3   :  { %s355_s8 = smov 0   ;;  %s357_s9 = smov 0  }
   0x4 LB: > { %s372_s10 = sadd.s32 4294967295, %s337_s9   ;;  %s183_s11 = sadd.s32 4294967294, %s337_s9   ;;  %s337_s9 = sphi %s357_s9, %s498_s9   ;;  %s333_s8 = sphi %s355_s8, %s497_s8   ;;  %s329_s7 = sphi %s353_s7, %s496_s7   ;;  %s325_s6 = sphi %s351_s6, %s495_s6  }
   0x5   : > { %s376_s12 = sadd.s32 1, %s337_s9   ;;  %s43_s13 = sadd.s32 1, %s333_s8 }
   0x6   : > { %s40_s14 = ssub.s32 %s337_s9, %s376_s12  ;;  %p53_p0 = scmp.ne.s32.totalorder %s333_s8, %s329_s7 }
   0x7   : > { %p41_p1 = scmp.eq.s32.totalorder %s40_s14, 0  ;;  %p54_p2 = scmp.eq.s32.totalorder %s372_s10, 1 }
   0x8   : > { %p59_p3 = scmp.ne.s32.totalorder %s329_s7, %s325_s6  ;;  %p60_p4 = scmp.eq.s32.totalorder %s183_s11, 1 }
   0x9   : > { %s387_s15 = scalar_select %p41_p1, %s333_s8, %s43_s13  }
   0xa   : > { %p389_p5 = por %p54_p2, %p53_p0  ;;  %p393_p6 = por %p60_p4, %p59_p3 }
   0xb   : > { %p184_p7 = scmp.ge.s32.totalorder %s337_s9, 1  ;;  %p67_p8 = scmp.lt.s32.totalorder %s337_s9, 3 }
   0xc   : > { %s486_s16 = scalar_select %p389_p5, 1, 0 }
   0xd   : > { %s487_s17 = scalar_select %p393_p6, 1, 0 }
   0xe   : > { %p483_p9 = scmp.eq.s32.totalorder %s372_s10, 0  ;;  %p400_p10 = pnand %p184_p7, %p67_p8 }
   0xf   : > { %s339_s19 = smov [#allocation2]   ;;  %s243_s24 = scalar_lea.hbm %s481_s0, 128 }
  0x10   : > { %s488_s18 = scalar_select %p400_p10, 1, 0 }
  0x11   : > { %s80_s20 = sshll.u32 %s339_s19, 4  ;;  %p199_p11 = pneg %p400_p10  ;;  %s81_s20 = int_to_ptr.vmem [resolvable:$true] %s80_s20 }
  0x12   : > { %p244_p13 = scmp.ne.s32.totalorder %s481_s0, %s243_s24  ;;  %p250_p3 = scmp.lt.u32.totalorder %s243_s24, %s481_s0 }
  0x13   : > { %p408_p12 = pnand %p483_p9, %p199_p11 }
  0x15   : > { %p245_p0 = pneg %p408_p12 }
  0x17   : > { %p246_p1 = pnand %p245_p0, %p244_p13 }
  0x19   : > { %p247_p2 = pneg %p246_p1 }
  0x1b   : > { %p252_p4 = pnand %p250_p3, %p247_p2 }
  0x1d   : > { %255 = shalt.err (!%p252_p4)
}
  0x1e   : > { %s256_s29 = scalar_lea.vmem %s81_s20, 128  ;;  %p264_p9 = scmp.lt.s32.totalorder %s81_s20, %s81_s20 }
  0x1f   : > { %p257_p7 = scmp.ne.s32.totalorder %s81_s20, %s256_s29  ;;  %p265_p6 = scmp.lt.s32.totalorder %s256_s29, %s256_s29 }
  0x21   : > { %p259_p8 = pnand %p257_p7, %p245_p0  ;;  %p266_p5 = por %p265_p6, %p264_p9 }
  0x23   : > { %p260_p11 = pneg %p259_p8 }
  0x25   : > { %p267_p10 = pnand %p266_p5, %p260_p11 }
  0x27   : > { %270 = shalt.err (!%p267_p10)
}
  0x28   : > { %202 = dma.hbm_to_vmem [thread:$0]  (!%p408_p12), %s481_s0, 128, %s81_s20, [#allocation3]  }
  0x29   : > { %p490_p13 = scmp.ne.s32.totalorder %s488_s18, 0 }
  0x2a   : > { %p491_p1 = scmp.eq.s32.totalorder (!%p490_p13), %s372_s10, 0 }
  0x2b   : > { %93 = sbr.rel (%p490_p13) target bundleno = 77 (0x4d), region = 24 }
  0x32   : > { %316 = dma.done.wait (%p491_p1), [#allocation3], 128   ;;  %p492_p0 = pmov %p491_p1 }
  0x33   : > { %s105_s3 = sand.u32 1, %s329_s7   ;;  %s190_s13 = sshll.u32 %s372_s10, 7  ;;  %v108_v0 = vld [vmem:[#allocation2] sm:$0xff] }
  0x34   : > { %318 = vsyncadd (%p492_p0), [#allocation3], 4294967168  ;;  %s188_s4 = sshll.u32 %s105_s3, 3  ;;  %s441_s18 = scalar_lea.hbm %s482_s1, %s190_s13 }
  0x35   : > { %s107_s5 = scalar_lea.vmem [#allocation5], %s188_s4  ;;  %s111_s20 = scalar_lea.sflag [#allocation4], %s105_s3 }
  0x36   : > { %s124_s11 = sshll.u32 %s107_s5, 4  ;;  %109 = vst [vmem:[%s107_s5] sm:$0xff] %v108_v0  ;;  %p493_p6 = scmp.ne.s32.totalorder %s486_s16, 0  ;;  %s436_s11 = int_to_ptr.vmem [resolvable:$true] %s124_s11 }
  0x37   : > { %s271_s21 = scalar_lea.vmem %s436_s11, 128  ;;  %s340_s22 = smov [#allocation5]  }
  0x38   : > { %p272_p5 = scmp.ne.s32.totalorder %s436_s11, %s271_s21  ;;  %s275_s10 = sshll.u32 %s340_s22, 4  ;;  %s276_s10 = int_to_ptr.vmem [resolvable:$false] %s275_s10 }
  0x39   : > { %s277_s23 = scalar_lea.vmem %s276_s10, 256  ;;  %p278_p12 = scmp.lt.s32.totalorder %s436_s11, %s276_s10 }
  0x3a   : > { %p273_p9 = pnand %p272_p5, %p493_p6  ;;  %p279_p2 = scmp.lt.s32.totalorder %s277_s23, %s271_s21 }
  0x3c   : > { %p274_p10 = pneg %p273_p9  ;;  %p280_p3 = por %p279_p2, %p278_p12 }
  0x3e   : > { %p281_p4 = pnand %p280_p3, %p274_p10 }
  0x40   : > { %284 = shalt.err (!%p281_p4)
}
  0x41   : > { %s285_s24 = scalar_lea.hbm %s441_s18, 128  ;;  %s289_s27 = scalar_lea.hbm %s482_s1, 256 }
  0x42   : > { %p286_p7 = scmp.ne.s32.totalorder %s441_s18, %s285_s24  ;;  %p290_p13 = scmp.lt.u32.totalorder %s441_s18, %s482_s1 }
  0x43   : > { %p291_p1 = scmp.lt.u32.totalorder %s289_s27, %s285_s24  ;;  %p293_p5 = scmp.lt.u32.totalorder %s285_s24, %s441_s18 }
  0x44   : > { %p287_p8 = pnand %p286_p7, %p493_p6 }
  0x45   : > { %p292_p0 = por %p291_p1, %p290_p13 }
  0x46   : > { %p288_p11 = pneg %p287_p8 }
  0x47   : > { %p294_p9 = por %p293_p5, %p292_p0 }
  0x49   : > { %p295_p10 = pnand %p294_p9, %p288_p11 }
  0x4b   : > { %298 = shalt.err (!%p295_p10)
}
  0x4c   : > { %197 = dma.vmem_to_hbm [thread:$0]  (%p493_p6), %s436_s11, 128, %s441_s18, %s111_s20  }
  0x4d PF: > { %p209_p12 = scmp.ge.s32.totalorder %s337_s9, 2  ;;  %s136_s30 = sand.u32 1, %s325_s6  }
  0x4e   : > { %p494_p2 = scmp.ne.s32.totalorder %s487_s17, 0  ;;  %s137_s2 = scalar_lea.sflag [#allocation4], %s136_s30 }
  0x50   : > { %p204_p3 = pnand %p209_p12, %p494_p2 }
  0x52   : > { %320 = dma.done.wait (!%p204_p3), %s137_s2, 128  }
  0x53   : > { %322 = vsyncadd (!%p204_p3), %s137_s2, 4294967168  ;;  %p12_p4 = scmp.ge.s32.totalorder %s376_s12, 4   ;;  %s495_s6 = smov %s329_s7 }
  0x54   : > { %s496_s7 = smov %s333_s8  ;;  %s497_s8 = smov %s387_s15 }
  0x55   : > { %s498_s9 = smov %s376_s12  ;;  %14 = sbr.rel (!%p12_p4) target bundleno = 4 (0x4), region = 61 }
  0x5c   :  { %142 = vsyncpa [#allocation3], 1 }
  0x5d   :  { %144 = vsyncpa [#allocation3 + $0x1], 1 }
  0x5e   :  { %145 = vsyncpa [#allocation4], 1 }
  0x5f   :  { %147 = vsyncpa [#allocation4 + $0x1], 1 }

// kernel: tpu_custom_call.1
= control target key start
LH: loop header
LB: loop body
LE: loop exit
PB: predicated region body
PF: predicated region fallthrough
CT: control target
= control target key end

     0   :  { %10 = vsyncpa [#allocation4], 0  ;;  %s693_s0 = inlined_call_operand.hbm [shape: f32[16,128], index: 0, kind: input, shape index: {}]   ;;  %s694_s1 = inlined_call_operand.hbm [shape: f32[128,128], index: 1, kind: input, shape index: {}]   ;;  %s695_s2 = inlined_call_operand.vmem [shape: f32[1,128], index: 2, kind: input, shape index: {}]   ;;  %s696_s3 = inlined_call_operand.hbm [shape: f32[128,128], index: 3, kind: input, shape index: {}]   ;;  %s697_s4 = inlined_call_operand.vmem [shape: f32[1,128], index: 4, kind: input, shape index: {}]   ;;  %s698_s5 = inlined_call_operand.hbm [shape: f32[16,128], index: 5, kind: output, shape index: {}]  }
   0x1   :  { %11 = vsyncpa [#allocation7], 0 }
   0x2   :  { %12 = vsyncpa [#allocation5], 0  ;;  %s584_s18 = smov [#allocation6]   ;;  %s585_s20 = smov [#allocation3]  }
   0x3   :  { %s30_s19 = sshll.u32 %s584_s18, 4  ;;  %s18_s21 = sshll.u32 %s585_s20, 4  ;;  %s31_s19 = int_to_ptr.vmem [resolvable:$true] %s30_s19  ;;  %s620_s21 = int_to_ptr.vmem [resolvable:$true] %s18_s21 }
   0x4   :  { %s490_s24 = scalar_lea.hbm %s694_s1, 2048 }
   0x5   :  { %p491_p0 = scmp.ne.s32.totalorder %s694_s1, %s490_s24  ;;  %p494_p1 = scmp.lt.u32.totalorder %s490_s24, %s694_s1 }
   0x7   :  { %p496_p2 = pnand %p494_p1, %p491_p0 }
   0x9   :  { %499 = shalt.err (!%p496_p2)
}
   0xa   :  { %s500_s29 = scalar_lea.vmem %s31_s19, 2048  ;;  %p505_p4 = scmp.lt.s32.totalorder %s31_s19, %s31_s19 }
   0xb   :  { %p501_p3 = scmp.ne.s32.totalorder %s31_s19, %s500_s29  ;;  %p506_p5 = scmp.lt.s32.totalorder %s500_s29, %s500_s29 }
   0xd   :  { %p507_p6 = por %p506_p5, %p505_p4 }
   0xf   :  { %p508_p7 = pnand %p507_p6, %p501_p3 }
  0x11   :  { %511 = shalt.err (!%p508_p7)
}
  0x12   :  { %s586_s30 = smov 128   ;;  %s587_s6 = smov 8  }
  0x13   :  { %36 = dma.hbm_to_vmem [thread:$0]  %s694_s1, 2048, %s31_s19, [#allocation7], %s586_s30, %s586_s30, %s587_s6  }
  0x14   :  { %s512_s11 = scalar_lea.hbm %s693_s0, 256 }
  0x15   :  { %p513_p8 = scmp.ne.s32.totalorder %s693_s0, %s512_s11  ;;  %p516_p9 = scmp.lt.u32.totalorder %s512_s11, %s693_s0 }
  0x17   :  { %p518_p10 = pnand %p516_p9, %p513_p8 }
  0x19   :  { %521 = shalt.err (!%p518_p10)
}
  0x1a   :  { %s522_s16 = scalar_lea.vmem %s620_s21, 256  ;;  %p527_p12 = scmp.lt.s32.totalorder %s620_s21, %s620_s21 }
  0x1b   :  { %p523_p11 = scmp.ne.s32.totalorder %s620_s21, %s522_s16  ;;  %p528_p13 = scmp.lt.s32.totalorder %s522_s16, %s522_s16 }
  0x1d   :  { %p529_p0 = por %p528_p13, %p527_p12 }
  0x1f   :  { %p530_p1 = pnand %p529_p0, %p523_p11 }
  0x21   :  { %533 = shalt.err (!%p530_p1)
}
  0x22   :  { %24 = dma.hbm_to_vmem [thread:$0]  %s693_s0, 256, %s620_s21, [#allocation4], %s586_s30, %s586_s30, %s587_s6  }
  0x23   :  { %s588_s18 = smov [#allocation8]   ;;  %s534_s23 = scalar_lea.hbm %s696_s3, 2048 }
  0x24   :  { %s44_s19 = sshll.u32 %s588_s18, 4  ;;  %p535_p2 = scmp.ne.s32.totalorder %s696_s3, %s534_s23  ;;  %s45_s19 = int_to_ptr.vmem [resolvable:$true] %s44_s19 }
  0x25   :  { %p538_p3 = scmp.lt.u32.totalorder %s534_s23, %s696_s3 }
  0x27   :  { %p540_p4 = pnand %p538_p3, %p535_p2 }
  0x29   :  { %543 = shalt.err (!%p540_p4)
}
  0x2a   :  { %s544_s28 = scalar_lea.vmem %s45_s19, 2048  ;;  %p549_p6 = scmp.lt.s32.totalorder %s45_s19, %s45_s19 }
  0x2b   :  { %p545_p5 = scmp.ne.s32.totalorder %s45_s19, %s544_s28  ;;  %p550_p7 = scmp.lt.s32.totalorder %s544_s28, %s544_s28 }
  0x2d   :  { %p551_p8 = por %p550_p7, %p549_p6 }
  0x2f   :  { %p552_p9 = pnand %p551_p8, %p545_p5 }
  0x31   :  { %555 = shalt.err (!%p552_p9)
}
  0x32   :  { %50 = dma.hbm_to_vmem [thread:$0]  %s696_s3, 2048, %s45_s19, [#allocation7], %s586_s30, %s586_s30, %s587_s6  }
  0x33   :  { %578 = dma.done.wait [#allocation4], 256  }
  0x34   :  { %579 = vsyncadd [#allocation4], 4294967040 }
  0x35   :  { %580 = dma.done.wait [#allocation7], 4096  }
  0x36   :  { %581 = vsyncadd [#allocation7], 4294963200  ;;  %v68_v0 = vld [vmem:[#allocation6] sm:$0xff]  ;;  %v69_v1 = vld [vmem:[#allocation6 + $0x8] sm:$0xff]  ;;  %s589_s8 = smov [#allocation9]  }
  0x37   :  { %v70_v2 = vld [vmem:[#allocation6 + $0x10] sm:$0xff]  ;;  %v412_v3 = vpack.c.bf16 %v69_v1, %v68_v0  ;;  %v71_v4 = vld [vmem:[#allocation6 + $0x18] sm:$0xff]  ;;  %v72_v6 = vld [vmem:[#allocation6 + $0x20] sm:$0xff]  ;;  %s289_s9 = sshll.u32 %s589_s8, 4  ;;  %s290_s9 = int_to_ptr.vmem [resolvable:$true] %s289_s9 }
  0x38   :  { %v416_v5 = vpack.c.bf16 %v71_v4, %v70_v2  ;;  %v73_v7 = vld [vmem:[#allocation6 + $0x28] sm:$0xff]  ;;  %v66_v9 = vld [vmem:[#allocation3] sm:$0xff]  ;;  %v75_v11 = vld [vmem:[#allocation6 + $0x38] sm:$0xff]  ;;  %s556_s10 = scalar_lea.vmem %s290_s9, 256  ;;  %p561_p11 = scmp.lt.s32.totalorder %s290_s9, %s290_s9 }
  0x39   :  { %413 = vmatprep.subr.bf16.mxu0 %v412_v3  ;;  %v420_v8 = vpack.c.bf16 %v73_v7, %v72_v6  ;;  %v74_v10 = vld [vmem:[#allocation6 + $0x30] sm:$0xff]  ;;  %374 = vmatprep.mubr.f32.mxu0 %v66_v9  ;;  %v76_v13 = vld [vmem:[#allocation6 + $0x40] sm:$0xff]  ;;  %v77_v14 = vld [vmem:[#allocation6 + $0x48] sm:$0xff]  ;;  %p557_p10 = scmp.ne.s32.totalorder %s290_s9, %s556_s10  ;;  %p562_p12 = scmp.lt.s32.totalorder %s556_s10, %s556_s10 }
  0x3a   :  { %415 = vmatpush3.bf16.msra.mxu0 %v412_v3  ;;  %v424_v12 = vpack.c.bf16 %v75_v11, %v74_v10  ;;  %v428_v15 = vpack.c.bf16 %v77_v14, %v76_v13  ;;  %v78_v16 = vld [vmem:[#allocation6 + $0x50] sm:$0xff]  ;;  %v79_v17 = vld [vmem:[#allocation6 + $0x58] sm:$0xff]  ;;  %v80_v19 = vld [vmem:[#allocation6 + $0x60] sm:$0xff] }
  0x3b   :  { %417 = vmatprep.subr.bf16.mxu0 %v416_v5  ;;  %v432_v18 = vpack.c.bf16 %v79_v17, %v78_v16  ;;  %v81_v20 = vld [vmem:[#allocation6 + $0x68] sm:$0xff]  ;;  %v82_v22 = vld [vmem:[#allocation6 + $0x70] sm:$0xff]  ;;  %v83_v23 = vld [vmem:[#allocation6 + $0x78] sm:$0xff]  ;;  %p563_p13 = por %p562_p12, %p561_p11 }
  0x3c   :  { %v436_v21 = vpack.c.bf16 %v81_v20, %v80_v19  ;;  %v440_v24 = vpack.c.bf16 %v83_v23, %v82_v22  ;;  %v67_v25 = vld [vmem:[#allocation3 + $0x8] sm:$0xff]  ;;  %v184_v26 = vld [vmem:[#allocation8] sm:$0xff]  ;;  %v185_v27 = vld [vmem:[#allocation8 + $0x8] sm:$0xff] }
  0x3d   :  { %v444_v28 = vpack.c.bf16 %v185_v27, %v184_v26  ;;  %v186_v29 = vld [vmem:[#allocation8 + $0x10] sm:$0xff]  ;;  %v187_v30 = vld [vmem:[#allocation8 + $0x18] sm:$0xff]  ;;  %v188_v32 = vld [vmem:[#allocation8 + $0x20] sm:$0xff]  ;;  %p564_p0 = pnand %p563_p13, %p557_p10 }
  0x3e   :  { %419 = vmatpush3.bf16.msra.mxu0 %v416_v5  ;;  %v448_v31 = vpack.c.bf16 %v187_v30, %v186_v29  ;;  %v189_v33 = vld [vmem:[#allocation8 + $0x28] sm:$0xff]  ;;  %v190_v35 = vld [vmem:[#allocation8 + $0x30] sm:$0xff]  ;;  %v191_v36 = vld [vmem:[#allocation8 + $0x38] sm:$0xff] }
  0x3f   :  { %421 = vmatprep.subr.bf16.mxu0 %v420_v8  ;;  %445 = vmatprep.subr.bf16.mxu1 %v444_v28  ;;  %v452_v34 = vpack.c.bf16 %v189_v33, %v188_v32  ;;  %v456_v37 = vpack.c.bf16 %v191_v36, %v190_v35  ;;  %v192_v38 = vld [vmem:[#allocation8 + $0x40] sm:$0xff]  ;;  %v193_v39 = vld [vmem:[#allocation8 + $0x48] sm:$0xff]  ;;  %v194_v41 = vld [vmem:[#allocation8 + $0x50] sm:$0xff] }
  0x40   :  { %447 = vmatpush3.bf16.msra.mxu1 %v444_v28  ;;  %v460_v40 = vpack.c.bf16 %v193_v39, %v192_v38  ;;  %v195_v42 = vld [vmem:[#allocation8 + $0x58] sm:$0xff]  ;;  %v196_v44 = vld [vmem:[#allocation8 + $0x60] sm:$0xff]  ;;  %v197_v45 = vld [vmem:[#allocation8 + $0x68] sm:$0xff] }
  0x41   :  { %449 = vmatprep.subr.bf16.mxu1 %v448_v31  ;;  %v464_v43 = vpack.c.bf16 %v195_v42, %v194_v41  ;;  %v468_v46 = vpack.c.bf16 %v197_v45, %v196_v44  ;;  %v198_v47 = vld [vmem:[#allocation8 + $0x70] sm:$0xff]  ;;  %v199_v48 = vld [vmem:[#allocation8 + $0x78] sm:$0xff] }
  0x42   :  { %423 = vmatpush3.bf16.msra.mxu0 %v420_v8  ;;  %v472_v49 = vpack.c.bf16 %v199_v48, %v198_v47  ;;  %v302_v50 = vld [vmem:[%s695_s2] ss:$0 sm:$0xff] }
  0x43   :  { %425 = vmatprep.subr.bf16.mxu0 %v424_v12  ;;  %v305_v1 = vld [vmem:[%s697_s4] ss:$0 sm:$0xff] }
  0x44   :  { %451 = vmatpush3.bf16.msra.mxu1 %v448_v31 }
  0x45   :  { %453 = vmatprep.subr.bf16.mxu1 %v452_v34 }
  0x46   :  { %427 = vmatpush3.bf16.msra.mxu0 %v424_v12 }
  0x47   :  { %429 = vmatprep.subr.bf16.mxu0 %v428_v15 }
  0x48   :  { %455 = vmatpush3.bf16.msra.mxu1 %v452_v34 }
  0x49   :  { %457 = vmatprep.subr.bf16.mxu1 %v456_v37 }
  0x4a   :  { %431 = vmatpush3.bf16.msra.mxu0 %v428_v15 }
  0x4b   :  { %433 = vmatprep.subr.bf16.mxu0 %v432_v18 }
  0x4c   :  { %459 = vmatpush3.bf16.msra.mxu1 %v456_v37 }
  0x4d   :  { %461 = vmatprep.subr.bf16.mxu1 %v460_v40 }
  0x4e   :  { %435 = vmatpush3.bf16.msra.mxu0 %v432_v18 }
  0x4f   :  { %437 = vmatprep.subr.bf16.mxu0 %v436_v21 }
  0x50   :  { %463 = vmatpush3.bf16.msra.mxu1 %v460_v40 }
  0x51   :  { %465 = vmatprep.subr.bf16.mxu1 %v464_v43 }
  0x52   :  { %439 = vmatpush3.bf16.msra.mxu0 %v436_v21 }
  0x53   :  { %441 = vmatprep.subr.bf16.mxu0 %v440_v24 }
  0x54   :  { %467 = vmatpush3.bf16.msra.mxu1 %v464_v43 }
  0x55   :  { %469 = vmatprep.subr.bf16.mxu1 %v468_v46 }
  0x56   :  { %443 = vmatpush3.bf16.msra.mxu0 %v440_v24 }
  0x58   :  { %471 = vmatpush3.bf16.msra.mxu1 %v468_v46 }
  0x59   :  { %375 = vmatmul.mubr.f32.vlgmr.msra.gmra.mrb[0].mxu0 %v67_v25  ;;  %473 = vmatprep.subr.bf16.mxu1 %v472_v49 }
  0x5c   :  { %475 = vmatpush3.bf16.msra.mxu1 %v472_v49 }
 0x12c   :  { %v376_v51 = vpop.f32.mrb[0].mxu0 }
 0x12d   :  { %v163_v52 = vadd.f32 %v376_v51, %v302_v50  ;;  %v157_v53 = vpop.f32.mrb[1].mxu0 }
 0x12e   :  { %v158_v54 = vadd.f32 %v302_v50, %v157_v53 }
 0x12f   :  { %v304_v55 = vmul.f32 -1.442695, %v163_v52 }
 0x130   :  { %v303_v56 = vmul.f32 -1.442695, %v158_v54 }
 0x131   :  { %482 = vpow2.f32 %v304_v55 }
 0x132   :  { %484 = vpow2.f32 %v303_v56 }
 0x13b   :  { %v483_v57 = vpop.eup %482 }
 0x13c   :  { %v485_v58 = vpop.eup %484  ;;  %v173_v59 = vadd.f32 1.0, %v483_v57 }
 0x13d   :  { %v172_v60 = vadd.f32 1.0, %v485_v58 }
 0x13e   :  { %486 = vrcp.f32 %v173_v59 }
 0x13f   :  { %488 = vrcp.f32 %v172_v60 }
 0x148   :  { %v487_v61 = vpop.eup %486 }
 0x149   :  { %v489_v62 = vpop.eup %488  ;;  %v179_v0 = vmul.f32 %v487_v61, %v163_v52 }
 0x14a   :  { %v178_v63 = vmul.f32 %v489_v62, %v158_v54 }
 0x14c   :  { %409 = vmatprep.mubr.f32.mxu1 %v178_v63 }
 0x14d   :  { %410 = vmatmul.mubr.f32.vlgmr.msra.gmra.mrb[0].mxu1 %v179_v0 }
 0x220   :  { %v411_v2 = vpop.f32.mrb[0].mxu1 }
 0x221   :  { %v279_v3 = vadd.f32 %v411_v2, %v305_v1  ;;  %v273_v4 = vpop.f32.mrb[1].mxu1 }
 0x222   :  { %v274_v5 = vadd.f32 %v305_v1, %v273_v4 }
 0x223   :  { %283 = vst [vmem:[#allocation9 + $0x8] sm:$0xff] %v279_v3 }
 0x224   :  { %282 = vst [vmem:[#allocation9] sm:$0xff] %v274_v5 }
 0x225   :  { %567 = shalt.err (!%p564_p0)
}
 0x226   :  { %s568_s4 = scalar_lea.hbm %s698_s5, 256 }
 0x227   :  { %p569_p1 = scmp.ne.s32.totalorder %s698_s5, %s568_s4  ;;  %p572_p2 = scmp.lt.u32.totalorder %s568_s4, %s698_s5 }
 0x229   :  { %p574_p3 = pnand %p572_p2, %p569_p1 }
 0x22b   :  { %577 = shalt.err (!%p574_p3)
}
 0x22c   :  { %295 = dma.vmem_to_hbm [thread:$0]  %s290_s9, 256, %s698_s5, [#allocation5], %s586_s30, %s586_s30, %s587_s6  }
 0x22d   :  { %582 = dma.done.wait [#allocation5], 256  }
 0x22e   :  { %583 = vsyncadd [#allocation5], 4294967040 }
 0x22f   :  { %299 = vsyncpa [#allocation4], 1 }
 0x230   :  { %300 = vsyncpa [#allocation7], 1 }
 0x231   :  { %301 = vsyncpa [#allocation5], 1 }

</bundles_post_ra>
